<compile_context>
chip_gen: v7x
topology: tpu7x:2x2x1
jax: 0.10.0
libtpu: 0.0.40
codegen_flags: <defaults>
</compile_context>

<pallas_src>
import jax
import jax.numpy as jnp
from jax.experimental import pallas as pl
from jax.experimental.pallas import tpu as pltpu


def _value_mlp_kernel(x_ref, w1_ref, b1_ref, w2_ref, b2_ref, w3_ref, b3_ref, o_ref):
    # Layer 1: [TB, D] @ [D, 256] on the MXU (f32 accumulate); bias + ReLU on the VPU in f32.
    h1 = jnp.dot(x_ref[...], w1_ref[...], preferred_element_type=jnp.float32)
    h1 = jnp.maximum(h1 + b1_ref[...], 0.0)

    # Layer 2: cast the activation back to the MXU compute dtype (bf16 halves the vreg/VMEM
    # footprint of the [TB, 256] intermediate); accumulate in f32.
    h2 = jnp.dot(h1.astype(w2_ref.dtype), w2_ref[...], preferred_element_type=jnp.float32)
    h2 = jnp.maximum(h2 + b2_ref[...], 0.0)

    # Layer 3 (out_features == 1): computed transposed, w3_row[1,64] . h2^T -> [1, TB], so the
    # result (and the output store) is lane-dense instead of a masked [TB, 1] column.
    h3 = jax.lax.dot_general(
        w3_ref[...], h2,
        dimension_numbers=(((1,), (1,)), ((), ())),
        preferred_element_type=jnp.float32,
    )                                                     # [1, TB]
    o_ref[0] = (h3 + b3_ref[...]).astype(o_ref.dtype)     # o_ref block is [1, 1, TB]


def value_model_forward(states, params, *, tile_b=512, compute_dtype=jnp.bfloat16):
    """states: [B, state_dim] float32 -> [B, 1] float32 (same math as the PyTorch module)."""
    w1, b1, w2, b2, w3, b3 = params
    B, D = states.shape
    H1 = w1.shape[1]
    H2 = w2.shape[1]

    # Effective batch tile: a multiple of 128 (lane-dense stores + (8,128) sublane rule), capped
    # at the 128-rounded batch so tiny batches don't DMA/compute a full default tile of padding.
    b_round = pl.cdiv(B, 128) * 128
    tile_b = max(128, min((tile_b // 128) * 128, b_round))

    num_tiles = pl.cdiv(B, tile_b)
    b_pad = num_tiles * tile_b

    x = states.astype(compute_dtype)
    if b_pad != B:  # pad the partial last batch tile; padded rows are sliced off below
        x = jnp.pad(x, ((0, b_pad - B), (0, 0)))

    w1c = w1.astype(compute_dtype)
    w2c = w2.astype(compute_dtype)
    w3_row = jnp.transpose(w3).astype(jnp.float32)   # [1, 64] row for the transposed final dot
    b1f = b1.astype(jnp.float32)
    b2f = b2.astype(jnp.float32)
    b3f = b3.astype(jnp.float32)

    isz = jnp.dtype(compute_dtype).itemsize
    cost = pl.CostEstimate(
        flops=2 * b_pad * (D * H1 + H1 * H2 + H2),
        transcendentals=0,
        bytes_accessed=(b_pad * D * isz                  # streamed activations
                        + b_pad * 4                      # output
                        + (D * H1 + H1 * H2) * isz       # resident weights
                        + (H1 + 2 * H2 + 1) * 4),        # w3 row + biases
    )

    resident = lambda a: pl.BlockSpec(a.shape, lambda i: (0,) * a.ndim)

    out = pl.pallas_call(
        _value_mlp_kernel,
        out_shape=jax.ShapeDtypeStruct((num_tiles, 1, tile_b), jnp.float32),
        grid=(num_tiles,),
        in_specs=[
            pl.BlockSpec((tile_b, D), lambda i: (i, 0)),  # streamed batch tile
            resident(w1c), resident(b1f),                 # weights/biases stay resident in VMEM
            resident(w2c), resident(b2f),
            resident(w3_row), resident(b3f),
        ],
        # [1, 1, TB] block: last two dims equal the array's, leading dim indexed by the grid
        # -> lane-dense, unmasked output stores.
        out_specs=pl.BlockSpec((1, 1, tile_b), lambda i: (i, 0, 0)),
        compiler_params=pltpu.CompilerParams(
            dimension_semantics=("parallel",),   # shard batch tiles across TCs (v7x megacore)
        ),
        cost_estimate=cost,
    )(x, w1c, b1f, w2c, b2f, w3_row, b3f)

    return out.reshape(b_pad, 1)[:B]


def init_params(key, state_dim):
    """Deterministic init mirroring PyTorch nn.Linear default (U[-1/sqrt(fan_in), +...])."""
    dims = [(state_dim, 256), (256, 64), (64, 1)]
    params = []
    for (fan_in, fan_out) in dims:
        key, kw, kb = jax.random.split(key, 3)
        bound = 1.0 / (fan_in ** 0.5)
        # stored as [in, out] (transposed vs torch's [out, in]) so the kernel does x @ W
        w = jax.random.uniform(kw, (fan_in, fan_out), jnp.float32, -bound, bound)
        b = jax.random.uniform(kb, (1, fan_out), jnp.float32, -bound, bound)
        params += [w, b]
    return tuple(params)


def _reference_forward(states, params, compute_dtype):
    """Pure-JAX reference of the same math/dtype path."""
    w1, b1, w2, b2, w3, b3 = params
    h = jnp.dot(states.astype(compute_dtype), w1.astype(compute_dtype),
                preferred_element_type=jnp.float32) + b1
    h = jnp.maximum(h, 0.0)
    h = jnp.dot(h.astype(compute_dtype), w2.astype(compute_dtype),
                preferred_element_type=jnp.float32) + b2
    h = jnp.maximum(h, 0.0)
    return jnp.dot(h, w3, preferred_element_type=jnp.float32) + b3


if __name__ == "__main__":
    key = jax.random.PRNGKey(0)
    state_dim = 32
    k_x1, k_x2, k_p = jax.random.split(key, 3)
    params = init_params(k_p, state_dim)

    # Case 1: tiny batch (adaptive tile caps at 128 -> single small tile), f32 MXU inputs.
    states_small = jax.random.normal(k_x1, (8, state_dim), jnp.float32)
    out_small = value_model_forward(states_small, params, compute_dtype=jnp.float32)
    jax.block_until_ready(out_small)
    ref_small = _reference_forward(states_small, params, jnp.float32)
    assert out_small.shape == (8, 1)
    assert jnp.allclose(out_small, ref_small, atol=1e-4, rtol=1e-4), \
        float(jnp.max(jnp.abs(out_small - ref_small)))

    # Case 2: multi-tile grid with a partial last tile, default bf16 MXU inputs.
    states_big = jax.random.normal(k_x2, (300, state_dim), jnp.float32)
    out_big = value_model_forward(states_big, params, tile_b=128)  # compute_dtype=bf16 default
    jax.block_until_ready(out_big)
    ref_big = _reference_forward(states_big, params, jnp.bfloat16)
    assert out_big.shape == (300, 1)
    assert jnp.allclose(out_big, ref_big, atol=2e-2, rtol=2e-2), \
        float(jnp.max(jnp.abs(out_big - ref_big)))

    print("KERNEL_OK")
</pallas_src>

<mosaic_0001>
module attributes {stable_mosaic.version = 11 : i64} {
  func.func @_value_mlp_kernel(%arg0: i32, %arg1: memref<128x32xf32, #tpu.memory_space<vmem>>, %arg2: memref<32x256xf32, #tpu.memory_space<vmem>>, %arg3: memref<1x256xf32, #tpu.memory_space<vmem>>, %arg4: memref<256x64xf32, #tpu.memory_space<vmem>>, %arg5: memref<1x64xf32, #tpu.memory_space<vmem>>, %arg6: memref<1x64xf32, #tpu.memory_space<vmem>>, %arg7: memref<1x1xf32, #tpu.memory_space<vmem>>, %arg8: memref<1x1x128xf32, #tpu.memory_space<vmem>>) attributes {dimension_semantics = [#tpu.dimension_semantics<parallel>], iteration_bounds = array<i64: 1>, scalar_prefetch = 0 : i64, scratch_operands = 0 : i64, tpu.core_type = #tpu.core_type<tc>, window_params = [{transform_indices = @transform_0, window_bounds = array<i64: 128, 32>}, {pipeline_mode = #tpu.pipeline_mode<synchronous>, transform_indices = @transform_1, window_bounds = array<i64: 32, 256>}, {pipeline_mode = #tpu.pipeline_mode<synchronous>, transform_indices = @transform_2, window_bounds = array<i64: 1, 256>}, {pipeline_mode = #tpu.pipeline_mode<synchronous>, transform_indices = @transform_3, window_bounds = array<i64: 256, 64>}, {pipeline_mode = #tpu.pipeline_mode<synchronous>, transform_indices = @transform_4, window_bounds = array<i64: 1, 64>}, {pipeline_mode = #tpu.pipeline_mode<synchronous>, transform_indices = @transform_5, window_bounds = array<i64: 1, 64>}, {pipeline_mode = #tpu.pipeline_mode<synchronous>, transform_indices = @transform_6, window_bounds = array<i64: 1, 1>}, {transform_indices = @transform_7, window_bounds = array<i64: 1, 1, 128>}]} {
    %c0 = arith.constant 0 : index
    %c0_0 = arith.constant 0 : index
    %0 = vector.load %arg1[%c0, %c0_0] : memref<128x32xf32, #tpu.memory_space<vmem>>, vector<128x32xf32>
    %c0_1 = arith.constant 0 : index
    %c0_2 = arith.constant 0 : index
    %1 = vector.load %arg2[%c0_1, %c0_2] : memref<32x256xf32, #tpu.memory_space<vmem>>, vector<32x256xf32>
    %cst = arith.constant dense<0.000000e+00> : vector<128x256xf32>
    %2 = tpu.matmul %0, %1, %cst {dimension_numbers = #tpu.dot_dimension_numbers<[1], [0], [0], [1], [0, 0, 1, 1], [], []>} : vector<128x32xf32>, vector<32x256xf32>, vector<128x256xf32> -> vector<128x256xf32>
    %c0_3 = arith.constant 0 : index
    %c0_4 = arith.constant 0 : index
    %3 = vector.load %arg3[%c0_3, %c0_4] : memref<1x256xf32, #tpu.memory_space<vmem>>, vector<1x256xf32>
    %4 = vector.broadcast %3 : vector<1x256xf32> to vector<128x256xf32>
    %5 = arith.addf %2, %4 : vector<128x256xf32>
    %cst_5 = arith.constant 0.000000e+00 : f32
    %6 = vector.broadcast %cst_5 : f32 to vector<128x256xf32>
    %7 = arith.maximumf %5, %6 : vector<128x256xf32>
    %c0_6 = arith.constant 0 : index
    %c0_7 = arith.constant 0 : index
    %8 = vector.load %arg4[%c0_6, %c0_7] : memref<256x64xf32, #tpu.memory_space<vmem>>, vector<256x64xf32>
    %cst_8 = arith.constant dense<0.000000e+00> : vector<128x64xf32>
    %9 = tpu.matmul %7, %8, %cst_8 {dimension_numbers = #tpu.dot_dimension_numbers<[1], [0], [0], [1], [0, 0, 1, 1], [], []>} : vector<128x256xf32>, vector<256x64xf32>, vector<128x64xf32> -> vector<128x64xf32>
    %c0_9 = arith.constant 0 : index
    %c0_10 = arith.constant 0 : index
    %10 = vector.load %arg5[%c0_9, %c0_10] : memref<1x64xf32, #tpu.memory_space<vmem>>, vector<1x64xf32>
    %11 = vector.broadcast %10 : vector<1x64xf32> to vector<128x64xf32>
    %12 = arith.addf %9, %11 : vector<128x64xf32>
    %cst_11 = arith.constant 0.000000e+00 : f32
    %13 = vector.broadcast %cst_11 : f32 to vector<128x64xf32>
    %14 = arith.maximumf %12, %13 : vector<128x64xf32>
    %c0_12 = arith.constant 0 : index
    %c0_13 = arith.constant 0 : index
    %15 = vector.load %arg6[%c0_12, %c0_13] : memref<1x64xf32, #tpu.memory_space<vmem>>, vector<1x64xf32>
    %cst_14 = arith.constant dense<0.000000e+00> : vector<1x128xf32>
    %16 = tpu.matmul %15, %14, %cst_14 {dimension_numbers = #tpu.dot_dimension_numbers<[1], [1], [0], [0], [0, 0, 1, 0], [], []>} : vector<1x64xf32>, vector<128x64xf32>, vector<1x128xf32> -> vector<1x128xf32>
    %c0_15 = arith.constant 0 : index
    %c0_16 = arith.constant 0 : index
    %17 = vector.load %arg7[%c0_15, %c0_16] : memref<1x1xf32, #tpu.memory_space<vmem>>, vector<1x1xf32>
    %18 = vector.broadcast %17 : vector<1x1xf32> to vector<1x128xf32>
    %19 = arith.addf %16, %18 : vector<1x128xf32>
    %c0_17 = arith.constant 0 : index
    %c0_18 = arith.constant 0 : index
    %c0_19 = arith.constant 0 : index
    %20 = vector.load %arg8[%c0_17, %c0_18, %c0_19] : memref<1x1x128xf32, #tpu.memory_space<vmem>>, vector<1x1x128xf32>
    %21 = vector.shape_cast %20 : vector<1x1x128xf32> to vector<1x128xf32>
    %22 = vector.shape_cast %19 : vector<1x128xf32> to vector<1x1x128xf32>
    tpu.vector_store %arg8[%c0_17, %c0_18, %c0_19], %22 {strides = array<i32>} : memref<1x1x128xf32, #tpu.memory_space<vmem>>, vector<1x1x128xf32>,
    return
  }
  func.func @transform_0(%arg0: i32) -> (i32, i32) {
    %c0_i32 = arith.constant 0 : i32
    %c0_i32_0 = arith.constant 0 : i32
    return %arg0, %c0_i32 : i32, i32
  }
  func.func @transform_1(%arg0: i32) -> (i32, i32) {
    %c0_i32 = arith.constant 0 : i32
    %c0_i32_0 = arith.constant 0 : i32
    %c0_i32_1 = arith.constant 0 : i32
    return %c0_i32, %c0_i32_0 : i32, i32
  }
  func.func @transform_2(%arg0: i32) -> (i32, i32) {
    %c0_i32 = arith.constant 0 : i32
    %c0_i32_0 = arith.constant 0 : i32
    %c0_i32_1 = arith.constant 0 : i32
    return %c0_i32, %c0_i32_0 : i32, i32
  }
  func.func @transform_3(%arg0: i32) -> (i32, i32) {
    %c0_i32 = arith.constant 0 : i32
    %c0_i32_0 = arith.constant 0 : i32
    %c0_i32_1 = arith.constant 0 : i32
    return %c0_i32, %c0_i32_0 : i32, i32
  }
  func.func @transform_4(%arg0: i32) -> (i32, i32) {
    %c0_i32 = arith.constant 0 : i32
    %c0_i32_0 = arith.constant 0 : i32
    %c0_i32_1 = arith.constant 0 : i32
    return %c0_i32, %c0_i32_0 : i32, i32
  }
  func.func @transform_5(%arg0: i32) -> (i32, i32) {
    %c0_i32 = arith.constant 0 : i32
    %c0_i32_0 = arith.constant 0 : i32
    %c0_i32_1 = arith.constant 0 : i32
    return %c0_i32, %c0_i32_0 : i32, i32
  }
  func.func @transform_6(%arg0: i32) -> (i32, i32) {
    %c0_i32 = arith.constant 0 : i32
    %c0_i32_0 = arith.constant 0 : i32
    %c0_i32_1 = arith.constant 0 : i32
    return %c0_i32, %c0_i32_0 : i32, i32
  }
  func.func @transform_7(%arg0: i32) -> (i32, i32, i32) {
    %c0_i32 = arith.constant 0 : i32
    %c0_i32_0 = arith.constant 0 : i32
    %c0_i32_1 = arith.constant 0 : i32
    return %arg0, %c0_i32, %c0_i32_0 : i32, i32, i32
  }
}

</mosaic_0001>

<bundles_post_ra>
// kernel: tpu_custom_call.1
= control target key start
LH: loop header
LB: loop body
LE: loop exit
PB: predicated region body
PF: predicated region fallthrough
CT: control target
= control target key end

     0   :  { %s1286_s0 = inlined_call_operand.vmem [shape: f32[128,32], index: 0, kind: input, shape index: {}]   ;;  %s1287_s1 = inlined_call_operand.vmem [shape: f32[32,256], index: 1, kind: input, shape index: {}]   ;;  %s1288_s2 = inlined_call_operand.vmem [shape: f32[1,256], index: 2, kind: input, shape index: {}]   ;;  %s1289_s3 = inlined_call_operand.vmem [shape: f32[256,64], index: 3, kind: input, shape index: {}]   ;;  %s1290_s4 = inlined_call_operand.vmem [shape: f32[1,64], index: 4, kind: input, shape index: {}]   ;;  %s1291_s5 = inlined_call_operand.vmem [shape: f32[1,64], index: 5, kind: input, shape index: {}]   ;;  %s1292_s6 = inlined_call_operand.<no memory space> [shape: f32[1,1], index: 6, kind: input, shape index: {}]   ;;  %s1293_s7 = inlined_call_operand.hbm [shape: f32[1,1,128], index: 7, kind: output, shape index: {}]  }
   0x1   :  { %v12_v0 = vstv %s1292_s6 }
   0x2   :  { %13 = vst [vmem:[#allocation2] sm:$0x1] %v12_v0 }
   0x3   :  { %v46_v1 = vld [vmem:[%s1287_s1 + $0x8] sm:$0xff]  ;;  %v48_v2 = vld [vmem:[%s1287_s1 + $0x18] sm:$0xff]  ;;  %v45_v3 = vld [vmem:[%s1287_s1] sm:$0xff]  ;;  %v923_v8 = vmov 0.0   ;;  %vm65_vm0 = vcmask 261120  }
   0x4   :  { %v821_v4 = vpack.c.bf16 %v48_v2, %v46_v1  ;;  %v47_v5 = vld [vmem:[%s1287_s1 + $0x10] sm:$0xff]  ;;  %v50_v6 = vld [vmem:[%s1287_s1 + $0x28] sm:$0xff]  ;;  %v52_v7 = vld [vmem:[%s1287_s1 + $0x38] sm:$0xff]  ;;  %178 = vmatprep.mubr.f32.mxu0 %v923_v8 }
   0x5   :  { %v823_v9 = vpack.c.bf16 %v47_v5, %v45_v3  ;;  %v825_v10 = vpack.c.bf16 %v52_v7, %v50_v6  ;;  %v49_v11 = vld [vmem:[%s1287_s1 + $0x20] sm:$0xff]  ;;  %v51_v12 = vld [vmem:[%s1287_s1 + $0x30] sm:$0xff]  ;;  %v324_v16 = vld [vmem:[%s1289_s3 + $0x88] sm:$0xff] }
   0x6   :  { %822 = vmatprep.subr.bf16.mxu0 %v821_v4  ;;  %v827_v13 = vpack.c.bf16 %v51_v12, %v49_v11  ;;  %v29_v14 = vld [vmem:[%s1286_s0] sm:$0xff]  ;;  %v308_v19 = vld [vmem:[%s1289_s3 + $0x8] sm:$0xff]  ;;  %v325_v20 = vld [vmem:[%s1289_s3 + $0x90] sm:$0xff] }
   0x7   :  { %824 = vmatpush1.bf16.msra.mxu0 %v823_v9  ;;  %v323_v15 = vld [vmem:[%s1289_s3 + $0x80] sm:$0xff]  ;;  %v326_v21 = vld [vmem:[%s1289_s3 + $0x98] sm:$0xff]  ;;  %v309_v24 = vld [vmem:[%s1289_s3 + $0x10] sm:$0xff] }
   0x8   :  { %826 = vmatprep.subr.bf16.mxu0 %v825_v10  ;;  %v307_v17 = vld [vmem:[%s1289_s3] sm:$0xff]  ;;  %v829_v18 = vpack.c.bf16 %v324_v16, %v323_v15  ;;  %v833_v23 = vpack.c.bf16 %v326_v21, %v325_v20  ;;  %v310_v25 = vld [vmem:[%s1289_s3 + $0x18] sm:$0xff]  ;;  %v328_v27 = vld [vmem:[%s1289_s3 + $0xa8] sm:$0xff] }
   0x9   :  { %v831_v22 = vpack.c.bf16 %v308_v19, %v307_v17  ;;  %v327_v26 = vld [vmem:[%s1289_s3 + $0xa0] sm:$0xff]  ;;  %v30_v28 = vld [vmem:[%s1286_s0 + $0x8] sm:$0xff]  ;;  %v835_v29 = vpack.c.bf16 %v310_v25, %v309_v24  ;;  %v329_v33 = vld [vmem:[%s1289_s3 + $0xb0] sm:$0xff] }
   0xa   :  { %830 = vmatprep.subr.bf16.mxu1 %v829_v18  ;;  %v837_v30 = vpack.c.bf16 %v328_v27, %v327_v26  ;;  %v311_v31 = vld [vmem:[%s1289_s3 + $0x20] sm:$0xff]  ;;  %v312_v32 = vld [vmem:[%s1289_s3 + $0x28] sm:$0xff]  ;;  %v330_v34 = vld [vmem:[%s1289_s3 + $0xb8] sm:$0xff] }
   0xb   :  { %828 = vmatpush1.bf16.msra.mxu0 %v827_v13  ;;  %832 = vmatpush3.bf16.msra.mxu1 %v831_v22  ;;  %v31_v35 = vld [vmem:[%s1286_s0 + $0x10] sm:$0xff]  ;;  %v839_v36 = vpack.c.bf16 %v312_v32, %v311_v31  ;;  %v841_v37 = vpack.c.bf16 %v330_v34, %v329_v33  ;;  %v314_v39 = vld [vmem:[%s1289_s3 + $0x38] sm:$0xff] }
   0xc   :  { %834 = vmatprep.subr.bf16.mxu1 %v833_v23  ;;  %v313_v38 = vld [vmem:[%s1289_s3 + $0x30] sm:$0xff] }
   0xe   :  { %655 = vmatmul.mubr.msk.f32.vlgmr.msra.gmra.mrb[0].mxu0 %vm65_vm0, %v29_v14 }
   0xf   :  { %184 = vmatprep.mubr.f32.mxu0 %v923_v8  ;;  %836 = vmatpush3.bf16.msra.mxu1 %v835_v29 }
  0x10   :  { %838 = vmatprep.subr.bf16.mxu1 %v837_v30 }
  0x12   :  { %656 = vmatmul.mubr.msk.f32.gmra.mrb[2].mxu0 %vm65_vm0, %v30_v28 }
  0x13   :  { %190 = vmatprep.mubr.f32.mxu0 %v923_v8 }
  0x14   :  { %14 = vsyncpa [#allocation4], 0  ;;  %v331_v40 = vld [vmem:[%s1289_s3 + $0xc0] sm:$0xff]  ;;  %v332_v41 = vld [vmem:[%s1289_s3 + $0xc8] sm:$0xff]  ;;  %840 = vmatpush3.bf16.msra.mxu1 %v839_v36  ;;  %v843_v43 = vpack.c.bf16 %v314_v39, %v313_v38  ;;  %v55_v15 = vlaneseq  ;;  %vm925_vm1 = vmmov 0   ;;  %vm518_vm2 = vcmask 523264  }
  0x15   :  { %v32_v42 = vld [vmem:[%s1286_s0 + $0x18] sm:$0xff]  ;;  %842 = vmatprep.subr.bf16.mxu1 %v841_v37  ;;  %v845_v44 = vpack.c.bf16 %v332_v41, %v331_v40  ;;  %v315_v45 = vld [vmem:[%s1289_s3 + $0x40] sm:$0xff]  ;;  %v316_v46 = vld [vmem:[%s1289_s3 + $0x48] sm:$0xff]  ;;  %s927_s16 = smov [#allocation3]  }
  0x16   :  { %657 = vmatmul.mubr.msk.f32.gmra.mrb[4].mxu0 %vm65_vm0, %v31_v35  ;;  %v333_v47 = vld [vmem:[%s1289_s3 + $0xd0] sm:$0xff]  ;;  %v334_v48 = vld [vmem:[%s1289_s3 + $0xd8] sm:$0xff]  ;;  %v33_v49 = vld [vmem:[%s1286_s0 + $0x20] sm:$0xff]  ;;  %v847_v50 = vpack.c.bf16 %v316_v46, %v315_v45  ;;  %v1171_v16 = vshrl.u32 %v55_v15, 7  ;;  %s647_s17 = sshll.u32 %s927_s16, 4  ;;  %s648_s17 = int_to_ptr.vmem [resolvable:$true] %s647_s17 }
  0x17   :  { %196 = vmatprep.mubr.f32.mxu0 %v923_v8  ;;  %v849_v51 = vpack.c.bf16 %v334_v48, %v333_v47  ;;  %v317_v52 = vld [vmem:[%s1289_s3 + $0x50] sm:$0xff]  ;;  %v318_v53 = vld [vmem:[%s1289_s3 + $0x58] sm:$0xff]  ;;  %v335_v54 = vld [vmem:[%s1289_s3 + $0xe0] sm:$0xff]  ;;  %s899_s18 = scalar_lea.vmem %s648_s17, 16  ;;  %s903_s19 = scalar_lea.vmem %s648_s17, 32 }
  0x18   :  { %844 = vmatpush3.bf16.msra.mxu1 %v843_v43  ;;  %v336_v55 = vld [vmem:[%s1289_s3 + $0xe8] sm:$0xff]  ;;  %v851_v57 = vpack.c.bf16 %v318_v53, %v317_v52  ;;  %v35_v59 = vld [vmem:[%s1286_s0 + $0x30] sm:$0xff]  ;;  %v36_v60 = vld [vmem:[%s1286_s0 + $0x38] sm:$0xff]  ;;  %v57_v17 = vsub.s32 0, %v1171_v16  ;;  %v61_v19 = vsub.s32 1, %v1171_v16  ;;  %p900_p0 = scmp.ne.s32.totalorder %s648_s17, %s899_s18  ;;  %p904_p1 = scmp.lt.s32.totalorder %s648_s17, %s648_s17 }
  0x19   :  { %846 = vmatprep.subr.bf16.mxu1 %v845_v44  ;;  %v34_v56 = vld [vmem:[%s1286_s0 + $0x28] sm:$0xff]  ;;  %v853_v58 = vpack.c.bf16 %v336_v55, %v335_v54  ;;  %v37_v61 = vld [vmem:[%s1286_s0 + $0x40] sm:$0xff]  ;;  %v39_v63 = vld [vmem:[%s1286_s0 + $0x50] sm:$0xff]  ;;  %p905_p2 = scmp.lt.s32.totalorder %s903_s19, %s899_s18 }
  0x1a   :  { %658 = vmatmul.mubr.msk.f32.gmra.mrb[6].mxu0 %vm65_vm0, %v32_v42  ;;  %v38_v62 = vld [vmem:[%s1286_s0 + $0x48] sm:$0xff]  ;;  %v40_v0 = vld [vmem:[%s1286_s0 + $0x58] sm:$0xff]  ;;  %v41_v1 = vld [vmem:[%s1286_s0 + $0x60] sm:$0xff] }
  0x1b   :  { %202 = vmatprep.mubr.f32.mxu0 %v923_v8  ;;  %v42_v2 = vld [vmem:[%s1286_s0 + $0x68] sm:$0xff]  ;;  %v43_v3 = vld [vmem:[%s1286_s0 + $0x70] sm:$0xff]  ;;  %v44_v4 = vld [vmem:[%s1286_s0 + $0x78] sm:$0xff]  ;;  %p906_p3 = por %p905_p2, %p904_p1 }
  0x1c   :  { %848 = vmatpush3.bf16.msra.mxu1 %v847_v50  ;;  %v319_v5 = vld [vmem:[%s1289_s3 + $0x60] sm:$0xff]  ;;  %v320_v6 = vld [vmem:[%s1289_s3 + $0x68] sm:$0xff]  ;;  %v337_v9 = vld [vmem:[%s1289_s3 + $0xf0] sm:$0xff] }
  0x1d   :  { %850 = vmatprep.subr.bf16.mxu1 %v849_v51  ;;  %v855_v7 = vpack.c.bf16 %v320_v6, %v319_v5  ;;  %v338_v10 = vld [vmem:[%s1289_s3 + $0xf8] sm:$0xff]  ;;  %v321_v12 = vld [vmem:[%s1289_s3 + $0x70] sm:$0xff]  ;;  %v53_v18 = vld [vmem:[%s1288_s2] sm:$0x3]  ;;  %p907_p4 = pnand %p906_p3, %p900_p0 }
  0x1e   :  { %659 = vmatmul.mubr.msk.f32.gmra.mrb[8].mxu0 %vm65_vm0, %v33_v49  ;;  %v857_v11 = vpack.c.bf16 %v338_v10, %v337_v9  ;;  %v322_v13 = vld [vmem:[%s1289_s3 + $0x78] sm:$0xff]  ;;  %v1180_v20 = vrot.slane %v53_v18, %v57_v17  ;;  %v1182_v21 = vrot.slane %v53_v18, %v61_v19  ;;  %vm1227_vm3 = vmpackc.low %vm518_vm2, %vm518_vm2 }
  0x1f   :  { %208 = vmatprep.mubr.f32.mxu0 %v923_v8  ;;  %v859_v14 = vpack.c.bf16 %v322_v13, %v321_v12 }
  0x20   :  { %852 = vmatpush3.bf16.msra.mxu1 %v851_v57 }
  0x21   :  { %854 = vmatprep.subr.bf16.mxu1 %v853_v58 }
  0x22   :  { %660 = vmatmul.mubr.msk.f32.gmra.mrb[10].mxu0 %vm65_vm0, %v34_v56 }
  0x23   :  { %214 = vmatprep.mubr.f32.mxu0 %v923_v8 }
  0x24   :  { %856 = vmatpush3.bf16.msra.mxu1 %v855_v7 }
  0x25   :  { %858 = vmatprep.subr.bf16.mxu1 %v857_v11 }
  0x26   :  { %661 = vmatmul.mubr.msk.f32.gmra.mrb[12].mxu0 %vm65_vm0, %v35_v59 }
  0x27   :  { %220 = vmatprep.mubr.f32.mxu0 %v923_v8 }
  0x28   :  { %860 = vmatpush3.bf16.msra.mxu1 %v859_v14 }
  0x2a   :  { %662 = vmatmul.mubr.msk.f32.gmra.mrb[14].mxu0 %vm65_vm0, %v36_v60 }
  0x2b   :  { %226 = vmatprep.mubr.f32.mxu0 %v923_v8 }
  0x2e   :  { %663 = vmatmul.mubr.msk.f32.gmra.mrb[16].mxu0 %vm65_vm0, %v37_v61 }
  0x2f   :  { %232 = vmatprep.mubr.f32.mxu0 %v923_v8 }
  0x32   :  { %664 = vmatmul.mubr.msk.f32.gmra.mrb[18].mxu0 %vm65_vm0, %v38_v62 }
  0x33   :  { %238 = vmatprep.mubr.f32.mxu0 %v923_v8 }
  0x36   :  { %665 = vmatmul.mubr.msk.f32.gmra.mrb[20].mxu0 %vm65_vm0, %v39_v63 }
  0x37   :  { %244 = vmatprep.mubr.f32.mxu0 %v923_v8 }
  0x3a   :  { %666 = vmatmul.mubr.msk.f32.gmra.mrb[22].mxu0 %vm65_vm0, %v40_v0 }
  0x3b   :  { %250 = vmatprep.mubr.f32.mxu0 %v923_v8 }
  0x3e   :  { %667 = vmatmul.mubr.msk.f32.gmra.mrb[24].mxu0 %vm65_vm0, %v41_v1 }
  0x3f   :  { %256 = vmatprep.mubr.f32.mxu0 %v923_v8 }
  0x42   :  { %668 = vmatmul.mubr.msk.f32.gmra.mrb[26].mxu0 %vm65_vm0, %v42_v2 }
  0x43   :  { %262 = vmatprep.mubr.f32.mxu0 %v923_v8 }
  0x46   :  { %669 = vmatmul.mubr.msk.f32.gmra.mrb[28].mxu0 %vm65_vm0, %v43_v3 }
  0x47   :  { %268 = vmatprep.mubr.f32.mxu0 %v923_v8 }
  0x4a   :  { %670 = vmatmul.mubr.msk.f32.gmra.mrb[30].mxu0 %vm65_vm0, %v44_v4 }
  0x4b   :  { %818 = vmatprep.mubr.msk.f32.mxu0 %vm925_vm1, %v923_v8 }
  0xe1   :  { %v180_v22 = vpop.f32.mrb[0].mxu0 }
  0xe2   :  { %v181_v23 = vadd.f32 %v180_v22, %v1180_v20  ;;  %v182_v24 = vpop.f32.mrb[1].mxu0 }
  0xe3   :  { %v183_v25 = vadd.f32 %v182_v24, %v1182_v21 }
  0xe4   :  { %v275_v28 = vmax.f32 %v181_v23, 0.0 }
  0xe5   :  { %v186_v26 = vpop.f32.mrb[2].mxu0  ;;  %v276_v27 = vmax.f32 %v183_v25, 0.0 }
  0xe6   :  { %v187_v29 = vadd.f32 %v186_v26, %v1180_v20  ;;  %v188_v30 = vpop.f32.mrb[3].mxu0 }
  0xe7   :  { %v189_v31 = vadd.f32 %v188_v30, %v1182_v21  ;;  %410 = vmatprep.mubr.f32.mxu1 %v276_v27 }
  0xe8   :  { %411 = vmatmul.mubr.f32.vlgmr.msra.gmra.mrb[0].mxu1 %v275_v28  ;;  %v277_v34 = vmax.f32 %v187_v29, 0.0 }
  0xe9   :  { %v278_v32 = vmax.f32 %v189_v31, 0.0  ;;  %v192_v33 = vpop.f32.mrb[4].mxu0 }
  0xea   :  { %v193_v35 = vadd.f32 %v192_v33, %v1180_v20  ;;  %v194_v36 = vpop.f32.mrb[5].mxu0 }
  0xeb   :  { %v195_v37 = vadd.f32 %v194_v36, %v1182_v21  ;;  %415 = vmatprep.mubr.f32.mxu1 %v278_v32 }
  0xec   :  { %416 = vmatmul.mubr.f32.gmra.mrb[2].mxu1 %v277_v34  ;;  %v279_v40 = vmax.f32 %v193_v35, 0.0 }
  0xed   :  { %v280_v38 = vmax.f32 %v195_v37, 0.0  ;;  %v198_v39 = vpop.f32.mrb[6].mxu0 }
  0xee   :  { %v199_v41 = vadd.f32 %v198_v39, %v1180_v20  ;;  %v200_v42 = vpop.f32.mrb[7].mxu0 }
  0xef   :  { %v201_v43 = vadd.f32 %v200_v42, %v1182_v21  ;;  %420 = vmatprep.mubr.f32.mxu1 %v280_v38 }
  0xf0   :  { %421 = vmatmul.mubr.f32.gmra.mrb[4].mxu1 %v279_v40  ;;  %v281_v46 = vmax.f32 %v199_v41, 0.0 }
  0xf1   :  { %v282_v44 = vmax.f32 %v201_v43, 0.0  ;;  %v204_v45 = vpop.f32.mrb[8].mxu0 }
  0xf2   :  { %v205_v47 = vadd.f32 %v204_v45, %v1180_v20  ;;  %v206_v48 = vpop.f32.mrb[9].mxu0 }
  0xf3   :  { %v207_v49 = vadd.f32 %v206_v48, %v1182_v21  ;;  %425 = vmatprep.mubr.f32.mxu1 %v282_v44 }
  0xf4   :  { %426 = vmatmul.mubr.f32.gmra.mrb[6].mxu1 %v281_v46  ;;  %v283_v52 = vmax.f32 %v205_v47, 0.0 }
  0xf5   :  { %v284_v50 = vmax.f32 %v207_v49, 0.0  ;;  %v210_v51 = vpop.f32.mrb[10].mxu0 }
  0xf6   :  { %v211_v53 = vadd.f32 %v210_v51, %v1180_v20  ;;  %v212_v54 = vpop.f32.mrb[11].mxu0 }
  0xf7   :  { %v213_v55 = vadd.f32 %v212_v54, %v1182_v21  ;;  %430 = vmatprep.mubr.f32.mxu1 %v284_v50 }
  0xf8   :  { %431 = vmatmul.mubr.f32.gmra.mrb[8].mxu1 %v283_v52  ;;  %v285_v58 = vmax.f32 %v211_v53, 0.0 }
  0xf9   :  { %v286_v56 = vmax.f32 %v213_v55, 0.0  ;;  %v216_v57 = vpop.f32.mrb[12].mxu0 }
  0xfa   :  { %v217_v59 = vadd.f32 %v216_v57, %v1180_v20  ;;  %v218_v60 = vpop.f32.mrb[13].mxu0 }
  0xfb   :  { %v219_v61 = vadd.f32 %v218_v60, %v1182_v21  ;;  %435 = vmatprep.mubr.f32.mxu1 %v286_v56  ;;  %v508_v60 = vld [vmem:[#allocation2] sm:$0x1] }
  0xfc   :  { %436 = vmatmul.mubr.f32.gmra.mrb[10].mxu1 %v285_v58  ;;  %v287_v0 = vmax.f32 %v217_v59, 0.0  ;;  %v924_v59 = vmov 0.0|0.0  }
  0xfd   :  { %v288_v62 = vmax.f32 %v219_v61, 0.0  ;;  %v222_v63 = vpop.f32.mrb[14].mxu0  ;;  %861 = vmatprep.subr.bf16.mxu0 %v924_v59  ;;  %v926_v61 = vmov 0  }
  0xfe   :  { %v223_v1 = vadd.f32 %v222_v63, %v1180_v20  ;;  %v224_v2 = vpop.f32.mrb[15].mxu0  ;;  %898 = vset.pattern.permute.xlu0 %v926_v61 }
  0xff   :  { %v225_v3 = vadd.f32 %v224_v2, %v1182_v21  ;;  %440 = vmatprep.mubr.f32.mxu1 %v288_v62  ;;  %511 = vperm.xlu0 %898, %v508_v60  }
 0x100   :  { %441 = vmatmul.mubr.f32.gmra.mrb[12].mxu1 %v287_v0  ;;  %v289_v6 = vmax.f32 %v223_v1, 0.0 }
 0x101   :  { %v290_v4 = vmax.f32 %v225_v3, 0.0  ;;  %v228_v5 = vpop.f32.mrb[16].mxu0 }
 0x102   :  { %v229_v7 = vadd.f32 %v228_v5, %v1180_v20  ;;  %v230_v9 = vpop.f32.mrb[17].mxu0 }
 0x103   :  { %v231_v10 = vadd.f32 %v230_v9, %v1182_v21  ;;  %445 = vmatprep.mubr.f32.mxu1 %v290_v4 }
 0x104   :  { %446 = vmatmul.mubr.f32.gmra.mrb[14].mxu1 %v289_v6  ;;  %v291_v13 = vmax.f32 %v229_v7, 0.0 }
 0x105   :  { %v292_v11 = vmax.f32 %v231_v10, 0.0  ;;  %v234_v12 = vpop.f32.mrb[18].mxu0 }
 0x106   :  { %v235_v14 = vadd.f32 %v234_v12, %v1180_v20  ;;  %v236_v15 = vpop.f32.mrb[19].mxu0 }
 0x107   :  { %v237_v18 = vadd.f32 %v236_v15, %v1182_v21  ;;  %450 = vmatprep.mubr.f32.mxu1 %v292_v11 }
 0x108   :  { %451 = vmatmul.mubr.f32.gmra.mrb[16].mxu1 %v291_v13  ;;  %v293_v23 = vmax.f32 %v235_v14, 0.0 }
 0x109   :  { %v294_v19 = vmax.f32 %v237_v18, 0.0  ;;  %v240_v22 = vpop.f32.mrb[20].mxu0 }
 0x10a   :  { %v241_v24 = vadd.f32 %v240_v22, %v1180_v20  ;;  %v242_v25 = vpop.f32.mrb[21].mxu0 }
 0x10b   :  { %v243_v26 = vadd.f32 %v242_v25, %v1182_v21  ;;  %455 = vmatprep.mubr.f32.mxu1 %v294_v19 }
 0x10c   :  { %456 = vmatmul.mubr.f32.gmra.mrb[18].mxu1 %v293_v23  ;;  %v295_v29 = vmax.f32 %v241_v24, 0.0 }
 0x10d   :  { %v296_v27 = vmax.f32 %v243_v26, 0.0  ;;  %v246_v28 = vpop.f32.mrb[22].mxu0 }
 0x10e   :  { %v247_v30 = vadd.f32 %v246_v28, %v1180_v20  ;;  %v248_v31 = vpop.f32.mrb[23].mxu0 }
 0x10f   :  { %v249_v32 = vadd.f32 %v248_v31, %v1182_v21  ;;  %460 = vmatprep.mubr.f32.mxu1 %v296_v27 }
 0x110   :  { %461 = vmatmul.mubr.f32.gmra.mrb[20].mxu1 %v295_v29  ;;  %v297_v35 = vmax.f32 %v247_v30, 0.0 }
 0x111   :  { %v298_v33 = vmax.f32 %v249_v32, 0.0  ;;  %v252_v34 = vpop.f32.mrb[24].mxu0 }
 0x112   :  { %v253_v36 = vadd.f32 %v252_v34, %v1180_v20  ;;  %v254_v37 = vpop.f32.mrb[25].mxu0 }
 0x113   :  { %v255_v38 = vadd.f32 %v254_v37, %v1182_v21  ;;  %465 = vmatprep.mubr.f32.mxu1 %v298_v33 }
 0x114   :  { %466 = vmatmul.mubr.f32.gmra.mrb[22].mxu1 %v297_v35  ;;  %v299_v41 = vmax.f32 %v253_v36, 0.0 }
 0x115   :  { %v300_v39 = vmax.f32 %v255_v38, 0.0  ;;  %v258_v40 = vpop.f32.mrb[26].mxu0 }
 0x116   :  { %v259_v42 = vadd.f32 %v258_v40, %v1180_v20  ;;  %v260_v43 = vpop.f32.mrb[27].mxu0 }
 0x117   :  { %v261_v44 = vadd.f32 %v260_v43, %v1182_v21  ;;  %470 = vmatprep.mubr.f32.mxu1 %v300_v39 }
 0x118   :  { %471 = vmatmul.mubr.f32.gmra.mrb[24].mxu1 %v299_v41  ;;  %v301_v47 = vmax.f32 %v259_v42, 0.0 }
 0x119   :  { %v302_v45 = vmax.f32 %v261_v44, 0.0  ;;  %v264_v46 = vpop.f32.mrb[28].mxu0 }
 0x11a   :  { %v265_v48 = vadd.f32 %v264_v46, %v1180_v20  ;;  %v266_v49 = vpop.f32.mrb[29].mxu0 }
 0x11b   :  { %v267_v50 = vadd.f32 %v266_v49, %v1182_v21  ;;  %475 = vmatprep.mubr.f32.mxu1 %v302_v45 }
 0x11c   :  { %476 = vmatmul.mubr.f32.gmra.mrb[26].mxu1 %v301_v47  ;;  %v303_v53 = vmax.f32 %v265_v48, 0.0 }
 0x11d   :  { %v304_v51 = vmax.f32 %v267_v50, 0.0  ;;  %v270_v52 = vpop.f32.mrb[30].mxu0 }
 0x11e   :  { %v271_v54 = vadd.f32 %v270_v52, %v1180_v20  ;;  %v272_v55 = vpop.f32.mrb[31].mxu0 }
 0x11f   :  { %v273_v56 = vadd.f32 %v272_v55, %v1182_v21  ;;  %480 = vmatprep.mubr.f32.mxu1 %v304_v51  ;;  %v1221_v21 = vld [vmem:[%s1290_s4] ss:$0 sm:$0xff] }
 0x120   :  { %481 = vmatmul.mubr.f32.gmra.mrb[28].mxu1 %v303_v53  ;;  %v305_v58 = vmax.f32 %v271_v54, 0.0 }
 0x121   :  { %v306_v57 = vmax.f32 %v273_v56, 0.0 }
 0x123   :  { %485 = vmatprep.mubr.f32.mxu1 %v306_v57 }
 0x124   :  { %486 = vmatmul.mubr.f32.gmra.mrb[30].mxu1 %v305_v58 }
 0x1bb   :  { %v721_v20 = vpop.f32.mrb[0].mxu1 }
 0x1bc   :  { %v722_v62 = vpop.f32.mrb[1].mxu1 }
 0x1bd   :  { %v723_v63 = vadd.f32 %v722_v62, %v721_v20 }
 0x1bf   :  { %v724_v0 = vpop.f32.mrb[2].mxu1  ;;  %v413_v2 = vadd.f32 %v723_v63, %v1221_v21 }
 0x1c0   :  { %v725_v1 = vpop.f32.mrb[3].mxu1 }
 0x1c1   :  { %v726_v3 = vadd.f32 %v725_v1, %v724_v0  ;;  %v491_v6 = vmax.f32 %v413_v2, 0.0 }
 0x1c3   :  { %v418_v4 = vadd.f32 %v726_v3, %v1221_v21  ;;  %v727_v8 = vpop.f32.mrb[4].mxu1 }
 0x1c4   :  { %v728_v5 = vpop.f32.mrb[5].mxu1 }
 0x1c5   :  { %v492_v7 = vmax.f32 %v418_v4, 0.0  ;;  %v729_v9 = vadd.f32 %v728_v5, %v727_v8 }
 0x1c7   :  { %v862_v11 = vpack.c.bf16 %v492_v7, %v491_v6  ;;  %v730_v12 = vpop.f32.mrb[6].mxu1  ;;  %v423_v14 = vadd.f32 %v729_v9, %v1221_v21 }
 0x1c8   :  { %v731_v13 = vpop.f32.mrb[7].mxu1 }
 0x1c9   :  { %v732_v15 = vadd.f32 %v731_v13, %v730_v12  ;;  %864 = vmatpush3.bf16.xpose.msk.msra.mxu0 %vm1227_vm3, %v862_v11  ;;  %v493_v23 = vmax.f32 %v423_v14, 0.0 }
 0x1ca   :  { %865 = vmatprep.subr.bf16.mxu0 %v924_v59 }
 0x1cb   :  { %v428_v18 = vadd.f32 %v732_v15, %v1221_v21  ;;  %v733_v19 = vpop.f32.mrb[8].mxu1 }
 0x1cc   :  { %v734_v22 = vpop.f32.mrb[9].mxu1 }
 0x1cd   :  { %v494_v24 = vmax.f32 %v428_v18, 0.0  ;;  %v735_v25 = vadd.f32 %v734_v22, %v733_v19 }
 0x1cf   :  { %v866_v26 = vpack.c.bf16 %v494_v24, %v493_v23  ;;  %v736_v27 = vpop.f32.mrb[10].mxu1  ;;  %v433_v29 = vadd.f32 %v735_v25, %v1221_v21 }
 0x1d0   :  { %v737_v28 = vpop.f32.mrb[11].mxu1 }
 0x1d1   :  { %v738_v30 = vadd.f32 %v737_v28, %v736_v27  ;;  %868 = vmatpush3.bf16.xpose.msk.msra.mxu0 %vm1227_vm3, %v866_v26  ;;  %v495_v34 = vmax.f32 %v433_v29, 0.0 }
 0x1d2   :  { %869 = vmatprep.subr.bf16.mxu0 %v924_v59 }
 0x1d3   :  { %v438_v31 = vadd.f32 %v738_v30, %v1221_v21  ;;  %v739_v32 = vpop.f32.mrb[12].mxu1 }
 0x1d4   :  { %v740_v33 = vpop.f32.mrb[13].mxu1 }
 0x1d5   :  { %v496_v35 = vmax.f32 %v438_v31, 0.0  ;;  %v741_v36 = vadd.f32 %v740_v33, %v739_v32  ;;  %v507_v31 = vld [vmem:[%s1291_s5] sm:$0x1]  ;;  %v512_v32 = vpop.permute.xlu0 %511 }
 0x1d6   :  { %v517_v33 = vrot.slane %v512_v32, %v57_v17 }
 0x1d7   :  { %v870_v37 = vpack.c.bf16 %v496_v35, %v495_v34  ;;  %v742_v38 = vpop.f32.mrb[14].mxu1  ;;  %v443_v40 = vadd.f32 %v741_v36, %v1221_v21 }
 0x1d8   :  { %v743_v39 = vpop.f32.mrb[15].mxu1 }
 0x1d9   :  { %v744_v41 = vadd.f32 %v743_v39, %v742_v38  ;;  %872 = vmatpush3.bf16.xpose.msk.msra.mxu0 %vm1227_vm3, %v870_v37  ;;  %v497_v45 = vmax.f32 %v443_v40, 0.0 }
 0x1da   :  { %873 = vmatprep.subr.bf16.mxu0 %v924_v59 }
 0x1db   :  { %v448_v42 = vadd.f32 %v744_v41, %v1221_v21  ;;  %v745_v43 = vpop.f32.mrb[16].mxu1 }
 0x1dc   :  { %v746_v44 = vpop.f32.mrb[17].mxu1 }
 0x1dd   :  { %v498_v46 = vmax.f32 %v448_v42, 0.0  ;;  %v747_v47 = vadd.f32 %v746_v44, %v745_v43 }
 0x1df   :  { %v874_v48 = vpack.c.bf16 %v498_v46, %v497_v45  ;;  %v748_v49 = vpop.f32.mrb[18].mxu1  ;;  %v453_v51 = vadd.f32 %v747_v47, %v1221_v21 }
 0x1e0   :  { %v749_v50 = vpop.f32.mrb[19].mxu1 }
 0x1e1   :  { %v750_v52 = vadd.f32 %v749_v50, %v748_v49  ;;  %876 = vmatpush3.bf16.xpose.msk.msra.mxu0 %vm1227_vm3, %v874_v48  ;;  %v499_v56 = vmax.f32 %v453_v51, 0.0 }
 0x1e2   :  { %877 = vmatprep.subr.bf16.mxu0 %v924_v59 }
 0x1e3   :  { %v458_v53 = vadd.f32 %v750_v52, %v1221_v21  ;;  %v751_v54 = vpop.f32.mrb[20].mxu1 }
 0x1e4   :  { %v752_v55 = vpop.f32.mrb[21].mxu1 }
 0x1e5   :  { %v500_v57 = vmax.f32 %v458_v53, 0.0  ;;  %v753_v58 = vadd.f32 %v752_v55, %v751_v54 }
 0x1e7   :  { %v878_v60 = vpack.c.bf16 %v500_v57, %v499_v56  ;;  %v754_v61 = vpop.f32.mrb[22].mxu1  ;;  %v463_v62 = vadd.f32 %v753_v58, %v1221_v21 }
 0x1e8   :  { %v755_v20 = vpop.f32.mrb[23].mxu1 }
 0x1e9   :  { %v756_v63 = vadd.f32 %v755_v20, %v754_v61  ;;  %880 = vmatpush3.bf16.xpose.msk.msra.mxu0 %vm1227_vm3, %v878_v60  ;;  %v501_v3 = vmax.f32 %v463_v62, 0.0 }
 0x1ea   :  { %881 = vmatprep.subr.bf16.mxu0 %v924_v59 }
 0x1eb   :  { %v468_v0 = vadd.f32 %v756_v63, %v1221_v21  ;;  %v757_v1 = vpop.f32.mrb[24].mxu1 }
 0x1ec   :  { %v758_v2 = vpop.f32.mrb[25].mxu1 }
 0x1ed   :  { %v502_v4 = vmax.f32 %v468_v0, 0.0  ;;  %v759_v8 = vadd.f32 %v758_v2, %v757_v1 }
 0x1ef   :  { %v882_v5 = vpack.c.bf16 %v502_v4, %v501_v3  ;;  %v760_v6 = vpop.f32.mrb[26].mxu1  ;;  %v473_v9 = vadd.f32 %v759_v8, %v1221_v21 }
 0x1f0   :  { %v761_v7 = vpop.f32.mrb[27].mxu1 }
 0x1f1   :  { %v762_v11 = vadd.f32 %v761_v7, %v760_v6  ;;  %884 = vmatpush3.bf16.xpose.msk.msra.mxu0 %vm1227_vm3, %v882_v5  ;;  %v503_v15 = vmax.f32 %v473_v9, 0.0 }
 0x1f2   :  { %885 = vmatprep.subr.bf16.mxu0 %v924_v59 }
 0x1f3   :  { %v478_v12 = vadd.f32 %v762_v11, %v1221_v21  ;;  %v763_v13 = vpop.f32.mrb[28].mxu1 }
 0x1f4   :  { %v764_v14 = vpop.f32.mrb[29].mxu1 }
 0x1f5   :  { %v504_v18 = vmax.f32 %v478_v12, 0.0  ;;  %v765_v19 = vadd.f32 %v764_v14, %v763_v13 }
 0x1f7   :  { %v886_v22 = vpack.c.bf16 %v504_v18, %v503_v15  ;;  %v766_v23 = vpop.f32.mrb[30].mxu1  ;;  %v483_v25 = vadd.f32 %v765_v19, %v1221_v21 }
 0x1f8   :  { %v767_v24 = vpop.f32.mrb[31].mxu1 }
 0x1f9   :  { %v768_v26 = vadd.f32 %v767_v24, %v766_v23  ;;  %888 = vmatpush3.bf16.xpose.msk.msra.mxu0 %vm1227_vm3, %v886_v22  ;;  %v505_v28 = vmax.f32 %v483_v25, 0.0 }
 0x1fa   :  { %889 = vmatprep.subr.bf16.mxu0 %v924_v59 }
 0x1fb   :  { %v488_v27 = vadd.f32 %v768_v26, %v1221_v21 }
 0x1fd   :  { %v506_v29 = vmax.f32 %v488_v27, 0.0 }
 0x1ff   :  { %v890_v30 = vpack.c.bf16 %v506_v29, %v505_v28 }
 0x201   :  { %892 = vmatpush3.bf16.xpose.msk.msra.mxu0 %vm1227_vm3, %v890_v30 }
 0x208   :  { %819 = vmatmul.mubr.msk.f32.vlgmr.msra.gmra.mrb[32].mxu0 %vm518_vm2, %v507_v31 }
 0x2db   :  { %v636_v59 = vpop.f32.mrb[32].mxu0 }
 0x2dc   :  { %v637_v21 = vadd.f32 %v636_v59, %v517_v33  ;;  %v820_v34 = vpop.f32.mrb[33].mxu0 }
 0x2de   :  { %640 = vst [vmem:[#allocation3] sm:$0x1] %v637_v21 }
 0x2df   :  { %910 = shalt.err (!%p907_p4)
}
 0x2e0   :  { %s911_s21 = scalar_lea.hbm %s1293_s7, 16 }
 0x2e1   :  { %p912_p5 = scmp.ne.s32.totalorder %s1293_s7, %s911_s21  ;;  %p915_p6 = scmp.lt.u32.totalorder %s911_s21, %s1293_s7 }
 0x2e3   :  { %p917_p7 = pnand %p915_p6, %p912_p5 }
 0x2e5   :  { %920 = shalt.err (!%p917_p7)
}
 0x2e6   :  { %650 = dma.vmem_to_hbm [thread:$0]  %s648_s17, 16, %s1293_s7, [#allocation4]  }
 0x2e7   :  { %921 = dma.done.wait [#allocation4], 16  }
 0x2e8   :  { %922 = vsyncadd [#allocation4], 4294967280 }
 0x2e9   :  { %654 = vsyncpa [#allocation4], 1 }

</bundles_post_ra>
